<compile_context>
chip_gen: v6e
topology: v6e:2x2x1
jax: 0.10.0
libtpu: 0.0.40
codegen_flags: <defaults>
</compile_context>

<pallas_src>
import functools

import jax
import jax.numpy as jnp
from jax.experimental import pallas as pl
from jax.experimental.pallas import tpu as pltpu

EPS = 1e-5


# ----------------------------------------------------------------------------
# Kernel
# ----------------------------------------------------------------------------
def mixer_kernel(enc_ref, hid_ref, mask_ref, w_ref, out_ref, *, H, Tv, Ts):
    Cpad = w_ref.shape[1]
    H2, H4 = 2 * H, 4 * H
    wdt = w_ref.dtype

    # Static row offsets into the single parameter slab (all multiples of 8).
    R_WE_T = 0                 # t_We   (H, H)      lanes 0:H
    R_WE_V = H                 # vd_We  (H, H)      lanes 0:H
    R_WH = 2 * H               # Wh_blk (4H, 2H)    lanes 0:2H   (block-diagonal)
    R_W1 = 6 * H               # W1_eff (4H, Cpad)  (fc folded into combiner-1)
    R_W2 = 10 * H              # c_W2   (Cpad, Cpad)
    R_VEC = 10 * H + Cpad      # vector rows

    def mm(a, b):
        # MXU matmul; optional low-precision operands, always f32 accumulation.
        return jnp.dot(a.astype(wdt), b, preferred_element_type=jnp.float32)

    def vec(r, width):
        return w_ref[R_VEC + r:R_VEC + r + 1, 0:width].astype(jnp.float32)

    hid_cat = hid_ref[...]                                    # (B, 4H) = [v_lh | s_lh]

    # Fused hidden projections for BOTH attentions: one matmul with K=4H.
    #   lanes 0:H  = v_lh @ t_Wh + t_b   (text attention conditions on video hidden)
    #   lanes H:2H = s_lh @ vd_Wh + vd_b (video attention conditions on text hidden)
    hidp = mm(hid_cat, w_ref[R_WH:R_WH + H4, 0:H2]) + vec(0, H2)   # (B, 2H)
    hidp_t = hidp[:, 0:H]
    hidp_v = hidp[:, H:H2]

    def attention(enc3, hidp_b, mask, We, v_row):
        # enc3 (B,T,H), hidp_b (B,H), mask (B,T), We (H,H), v_row (1,H)
        Bb, T, Hh = enc3.shape
        # One (B*T,H)@(H,H) MXU issue; T is a multiple of 8 so the reshape is a
        # layout-preserving no-op (no VMEM relayout).
        proj = mm(enc3.reshape(Bb * T, Hh), We).reshape(Bb, T, Hh)
        act = jnp.tanh(proj + hidp_b[:, None, :])
        # Score projection on VPU (mul) + XLU (lane reduce); keeps the MXU free.
        scores = jnp.sum(act * v_row.reshape(1, 1, Hh), axis=-1)       # (B, T)
        scores = jnp.where(mask > 0.5, scores, -1e30)
        m = jnp.max(scores, axis=-1, keepdims=True)
        e = jnp.exp(scores - m)
        w = e / jnp.sum(e, axis=-1, keepdims=True)                     # (B, T)
        return jnp.sum(w[:, :, None] * enc3, axis=1)                   # (B, H)

    text_ctx = attention(enc_ref[:, Tv:Tv + Ts, :], hidp_t,
                         mask_ref[:, Tv:Tv + Ts],
                         w_ref[R_WE_T:R_WE_T + H, 0:H], vec(1, H))
    video_ctx = attention(enc_ref[:, 0:Tv, :], hidp_v,
                          mask_ref[:, 0:Tv],
                          w_ref[R_WE_V:R_WE_V + H, 0:H], vec(2, H))

    # Folded eval-mode BatchNorm on the lane-concatenated contexts: one FMA.
    ctx_cat = jnp.concatenate([text_ctx, video_ctx], axis=-1)          # (B, 2H)
    ctx_cat = ctx_cat * vec(3, H2) + vec(4, H2)
    t_ctx, v_ctx = ctx_cat[:, 0:H], ctx_cat[:, H:H2]

    # fc() was folded into combiner layer 1 at pack time, so the combiner LHS is
    # just [text|video|t*v|t+v] -> exactly 4H = 128 lanes at H=32 (lane-dense K).
    comb_in = jnp.concatenate([ctx_cat, t_ctx * v_ctx, t_ctx + v_ctx], axis=-1)

    h1 = mm(comb_in, w_ref[R_W1:R_W1 + H4, :])                         # (B, Cpad)
    h1 = jnp.maximum(h1 * vec(5, Cpad) + vec(6, Cpad), 0.0)
    # TODO(synk): Dropout treated as identity (eval-mode semantics).
    h2 = mm(h1, w_ref[R_W2:R_W2 + Cpad, :])                            # (B, Cpad)
    out_ref[...] = jnp.maximum(h2 * vec(7, Cpad) + vec(8, Cpad), 0.0)


# ----------------------------------------------------------------------------
# Parameter packing (one-time, wrapper-side): 16 tensors -> one 128-lane slab
# ----------------------------------------------------------------------------
def _fold_bn(bn):
    # bn rows: [gamma, beta, running_mean, running_var], shape (4, C)
    gamma, beta, mean, var = bn[0], bn[1], bn[2], bn[3]
    scale = gamma * jax.lax.rsqrt(var + EPS)
    bias = beta - mean * scale
    return scale, bias


def pack_params(params, H, param_dtype=jnp.float32):
    """Pack all parameters into one lane-dense (10H + Cpad + 16, Cpad) slab.

    param_dtype=jnp.bfloat16 is recommended on v6e/v7x (MXU-native operands,
    half the slab DMA bytes); accumulation and elementwise math stay f32.
    """
    (t_We, t_Wh, t_b, t_v, vd_We, vd_Wh, vd_b, vd_v,
     t_bn, v_bn, fc_W, fc_b, c_W1, c_bn1, c_W2, c_bn2) = params
    f32 = jnp.float32
    C = 3 * H
    Cpad = ((C + 127) // 128) * 128
    H2, H4 = 2 * H, 4 * H

    # Block-diagonal fused hidden-projection weight: [v_lh|s_lh] @ Wh_blk gives
    # the text hidp in lanes 0:H and the video hidp in lanes H:2H in one matmul.
    Wh_blk = jnp.zeros((H4, H2), f32)
    Wh_blk = Wh_blk.at[0:H2, 0:H].set(t_Wh.astype(f32))
    Wh_blk = Wh_blk.at[H2:H4, H:H2].set(vd_Wh.astype(f32))

    # Fold fc (Linear(2H->H)) into combiner layer 1 (exact algebra):
    #   [fc(ctx_cat), t*v, t+v] @ c_W1 == [ctx_cat, t*v, t+v] @ W1_eff + fc_b @ c_W1[:H]
    c_W1 = c_W1.astype(f32)
    c_W1a, c_W1b, c_W1c = c_W1[0:H], c_W1[H:2 * H], c_W1[2 * H:3 * H]
    W1_eff = jnp.concatenate([fc_W.astype(f32) @ c_W1a, c_W1b, c_W1c], axis=0)  # (4H, 3H)
    bias1_eff = (fc_b.astype(f32).reshape(1, H) @ c_W1a).reshape(-1)            # (3H,)

    # Folded eval-mode BatchNorm stats.
    t_s, t_bb = _fold_bn(t_bn.astype(f32))
    v_s, v_bb = _fold_bn(v_bn.astype(f32))
    s1, b1 = _fold_bn(c_bn1.astype(f32))
    s2, b2 = _fold_bn(c_bn2.astype(f32))
    b1_eff = bias1_eff * s1 + b1     # fc bias folded through combiner BN1 too

    def padm(m, rows):
        m = jnp.asarray(m, f32)
        return jnp.pad(m, ((0, rows - m.shape[0]), (0, Cpad - m.shape[1])))

    def row(v):
        v = jnp.asarray(v, f32).reshape(-1)
        return jnp.pad(v, (0, Cpad - v.shape[0]))[None, :]

    slab = jnp.concatenate([
        padm(t_We, H),                                              # rows [0, H)
        padm(vd_We, H),                                             # rows [H, 2H)
        padm(Wh_blk, H4),                                           # rows [2H, 6H)
        padm(W1_eff, H4),                                           # rows [6H, 10H)
        padm(c_W2, Cpad),                                           # rows [10H, 10H+Cpad)
        row(jnp.concatenate([t_b.reshape(-1), vd_b.reshape(-1)])),  # vec 0: [t_b | vd_b]
        row(t_v.reshape(-1)),                                       # vec 1: text score vec
        row(vd_v.reshape(-1)),                                      # vec 2: video score vec
        row(jnp.concatenate([t_s, v_s])),                           # vec 3: ctx BN scale
        row(jnp.concatenate([t_bb, v_bb])),                         # vec 4: ctx BN bias
        row(s1),                                                    # vec 5: BN1 scale
        row(b1_eff),                                                # vec 6: BN1 bias (+fc bias)
        row(s2),                                                    # vec 7: BN2 scale
        row(b2),                                                    # vec 8: BN2 bias
        jnp.zeros((7, Cpad), f32),                                  # pad vec block to 16 rows
    ], axis=0)
    return slab.astype(param_dtype)


# ----------------------------------------------------------------------------
# Wrapper
# ----------------------------------------------------------------------------
def feature_mixer_type0(inputs, params_slab, H):
    (v_enc, v_lh, v_mask, s_enc, s_lh, s_mask) = inputs
    if v_mask.ndim == 3:
        v_mask = v_mask[..., 0]
    if s_mask.ndim == 3:
        s_mask = s_mask[..., 0]
    B, Tv, _ = v_enc.shape
    Ts = s_enc.shape[1]
    Cpad = params_slab.shape[1]
    C = 3 * H
    f32 = jnp.float32

    # Wrapper-side input merge: 3 activation DMAs + 1 parameter-slab DMA.
    enc_all = jnp.concatenate([v_enc, s_enc], axis=1).astype(f32)     # (B, Tv+Ts, H)
    hid_cat = jnp.concatenate([v_lh, s_lh], axis=1).astype(f32)       # (B, 4H)
    mask_all = jnp.concatenate([v_mask, s_mask], axis=1).astype(f32)  # (B, Tv+Ts)

    args = (enc_all, hid_cat, mask_all, params_slab)
    vmem = pl.BlockSpec(memory_space=pltpu.MemorySpace.VMEM)

    flops = int(2 * B * (Tv + Ts) * H * H       # enc projections
                + 2 * B * 4 * H * 2 * H         # fused hidden projection
                + 4 * B * (Tv + Ts) * H         # scores + context reductions
                + 2 * B * 4 * H * Cpad          # combiner layer 1 (fc folded in)
                + 2 * B * Cpad * Cpad)          # combiner layer 2
    transcendentals = int(B * (Tv + Ts) * (H + 1))
    bytes_accessed = int(sum(int(a.size) * a.dtype.itemsize for a in args)
                         + B * Cpad * 4)

    out = pl.pallas_call(
        functools.partial(mixer_kernel, H=H, Tv=Tv, Ts=Ts),
        out_shape=jax.ShapeDtypeStruct((B, Cpad), f32),
        in_specs=[vmem] * len(args),
        out_specs=vmem,
        cost_estimate=pl.CostEstimate(flops=flops,
                                      transcendentals=transcendentals,
                                      bytes_accessed=bytes_accessed),
    )(*args)
    return out[:, :C]


# ----------------------------------------------------------------------------
# Pure-JAX reference (original, unpacked math) for correctness checking
# ----------------------------------------------------------------------------
def feature_mixer_type0_ref(inputs, params):
    (v_enc, v_lh, v_mask, s_enc, s_lh, s_mask) = inputs
    (t_We, t_Wh, t_b, t_v, vd_We, vd_Wh, vd_b, vd_v,
     t_bn, v_bn, fc_W, fc_b, c_W1, c_bn1, c_W2, c_bn2) = params

    def attn(enc, hid, mask, We, Wh, b, vvec):
        proj = jnp.einsum('bth,hk->btk', enc, We)
        hidp = hid @ Wh + b
        act = jnp.tanh(proj + hidp[:, None, :])
        scores = jnp.einsum('bth,ho->bt', act, vvec)
        scores = jnp.where(mask > 0.5, scores, -1e30)
        w = jax.nn.softmax(scores, axis=-1)
        return jnp.sum(w[:, :, None] * enc, axis=1)

    def bn(x, tbl):
        gamma, beta, mean, var = tbl[0], tbl[1], tbl[2], tbl[3]
        return gamma * (x - mean) * jax.lax.rsqrt(var + EPS) + beta

    text_ctx = bn(attn(s_enc, v_lh, s_mask, t_We, t_Wh, t_b, t_v), t_bn)
    video_ctx = bn(attn(v_enc, s_lh, v_mask, vd_We, vd_Wh, vd_b, vd_v), v_bn)
    fc_out = jnp.concatenate([text_ctx, video_ctx], axis=1) @ fc_W + fc_b
    comb_in = jnp.concatenate(
        [fc_out, text_ctx * video_ctx, text_ctx + video_ctx], axis=1)
    h1 = jnp.maximum(bn(comb_in @ c_W1, c_bn1), 0.0)
    h2 = jnp.maximum(bn(h1 @ c_W2, c_bn2), 0.0)
    return h2


# ----------------------------------------------------------------------------
# Synthetic test
# ----------------------------------------------------------------------------
def _make_bn(key, C):
    k1, k2, k3, k4 = jax.random.split(key, 4)
    gamma = 1.0 + 0.1 * jax.random.normal(k1, (C,), jnp.float32)
    beta = 0.1 * jax.random.normal(k2, (C,), jnp.float32)
    mean = 0.1 * jax.random.normal(k3, (C,), jnp.float32)
    var = 0.5 + 0.5 * jax.random.uniform(k4, (C,), jnp.float32)
    return jnp.stack([gamma, beta, mean, var], axis=0)  # (4, C)


if __name__ == "__main__":
    B, Tv, Ts, H = 4, 16, 8, 32

    key = jax.random.PRNGKey(0)
    ks = jax.random.split(key, 24)
    nrm = lambda k, s, sc=0.1: sc * jax.random.normal(k, s, jnp.float32)

    # Inputs
    v_enc = nrm(ks[0], (B, Tv, H), 1.0)
    v_lh = nrm(ks[1], (B, 2 * H), 1.0)
    s_enc = nrm(ks[2], (B, Ts, H), 1.0)
    s_lh = nrm(ks[3], (B, 2 * H), 1.0)
    v_len = jnp.array([16, 12, 9, 5], jnp.int32)
    s_len = jnp.array([8, 6, 3, 7], jnp.int32)
    v_mask = (jnp.arange(Tv)[None, :] < v_len[:, None]).astype(jnp.float32)  # (B,Tv)
    s_mask = (jnp.arange(Ts)[None, :] < s_len[:, None]).astype(jnp.float32)  # (B,Ts)

    # Parameters (deterministic synthetic init, original PyTorch-style layout)
    t_We, t_Wh = nrm(ks[4], (H, H)), nrm(ks[5], (2 * H, H))
    t_b, t_v = nrm(ks[6], (1, H)), nrm(ks[7], (H, 1))
    vd_We, vd_Wh = nrm(ks[8], (H, H)), nrm(ks[9], (2 * H, H))
    vd_b, vd_v = nrm(ks[10], (1, H)), nrm(ks[11], (H, 1))
    t_bn = _make_bn(ks[12], H)
    v_bn = _make_bn(ks[13], H)
    fc_W, fc_b = nrm(ks[14], (2 * H, H)), nrm(ks[15], (1, H))
    c_W1 = nrm(ks[16], (3 * H, 3 * H))
    c_bn1 = _make_bn(ks[17], 3 * H)
    c_W2 = nrm(ks[18], (3 * H, 3 * H))
    c_bn2 = _make_bn(ks[19], 3 * H)

    inputs = (v_enc, v_lh, v_mask, s_enc, s_lh, s_mask)
    params = (t_We, t_Wh, t_b, t_v, vd_We, vd_Wh, vd_b, vd_v,
              t_bn, v_bn, fc_W, fc_b, c_W1, c_bn1, c_W2, c_bn2)

    # param_dtype=jnp.bfloat16 recommended on v6e/v7x; f32 here for exact parity.
    packed = pack_params(params, H, param_dtype=jnp.float32)

    out = jax.block_until_ready(feature_mixer_type0(inputs, packed, H))
    ref = jax.block_until_ready(feature_mixer_type0_ref(inputs, params))

    assert out.shape == (B, 3 * H), out.shape
    assert jnp.allclose(out, ref, atol=1e-3, rtol=1e-3), \
        f"max abs err {jnp.max(jnp.abs(out - ref))}"
    print("KERNEL_OK")
</pallas_src>

<mosaic_0001>
module attributes {stable_mosaic.version = 11 : i64} {
  func.func @mixer_kernel(%arg0: memref<4x24x32xf32, #tpu.memory_space<vmem>>, %arg1: memref<4x128xf32, #tpu.memory_space<vmem>>, %arg2: memref<4x24xf32, #tpu.memory_space<vmem>>, %arg3: memref<464x128xf32, #tpu.memory_space<vmem>>, %arg4: memref<4x128xf32, #tpu.memory_space<vmem>>) attributes {dimension_semantics = [], scalar_prefetch = 0 : i64, scratch_operands = 0 : i64, tpu.core_type = #tpu.core_type<tc>} {
    %c0 = arith.constant 0 : index
    %c0_0 = arith.constant 0 : index
    %0 = vector.load %arg1[%c0, %c0_0] : memref<4x128xf32, #tpu.memory_space<vmem>>, vector<4x128xf32>
    %c64 = arith.constant 64 : index
    %c0_1 = arith.constant 0 : index
    %1 = vector.load %arg3[%c64, %c0_1] : memref<464x128xf32, #tpu.memory_space<vmem>>, vector<128x64xf32>
    %cst = arith.constant dense<0.000000e+00> : vector<4x64xf32>
    %2 = tpu.matmul %0, %1, %cst {dimension_numbers = #tpu.dot_dimension_numbers<[1], [0], [0], [1], [0, 0, 1, 1], [], []>} : vector<4x128xf32>, vector<128x64xf32>, vector<4x64xf32> -> vector<4x64xf32>
    %c448 = arith.constant 448 : index
    %c0_2 = arith.constant 0 : index
    %3 = vector.load %arg3[%c448, %c0_2] : memref<464x128xf32, #tpu.memory_space<vmem>>, vector<1x64xf32>
    %4 = vector.broadcast %3 : vector<1x64xf32> to vector<4x64xf32>
    %5 = arith.addf %2, %4 : vector<4x64xf32>
    %6 = vector.extract_strided_slice %5 {offsets = [0, 0], sizes = [4, 32], strides = [1, 1]} : vector<4x64xf32> to vector<4x32xf32>
    %7 = vector.extract_strided_slice %5 {offsets = [0, 32], sizes = [4, 32], strides = [1, 1]} : vector<4x64xf32> to vector<4x32xf32>
    %c0_3 = arith.constant 0 : index
    %c16 = arith.constant 16 : index
    %c0_4 = arith.constant 0 : index
    %8 = vector.load %arg0[%c0_3, %c16, %c0_4] : memref<4x24x32xf32, #tpu.memory_space<vmem>>, vector<4x8x32xf32>
    %c0_5 = arith.constant 0 : index
    %c16_6 = arith.constant 16 : index
    %9 = vector.load %arg2[%c0_5, %c16_6] : memref<4x24xf32, #tpu.memory_space<vmem>>, vector<4x8xf32>
    %c0_7 = arith.constant 0 : index
    %c0_8 = arith.constant 0 : index
    %10 = vector.load %arg3[%c0_7, %c0_8] : memref<464x128xf32, #tpu.memory_space<vmem>>, vector<32x32xf32>
    %c449 = arith.constant 449 : index
    %c0_9 = arith.constant 0 : index
    %11 = vector.load %arg3[%c449, %c0_9] : memref<464x128xf32, #tpu.memory_space<vmem>>, vector<1x32xf32>
    %12 = vector.shape_cast %8 : vector<4x8x32xf32> to vector<32x32xf32>
    %cst_10 = arith.constant dense<0.000000e+00> : vector<32x32xf32>
    %13 = tpu.matmul %12, %10, %cst_10 {dimension_numbers = #tpu.dot_dimension_numbers<[1], [0], [0], [1], [0, 0, 1, 1], [], []>} : vector<32x32xf32>, vector<32x32xf32>, vector<32x32xf32> -> vector<32x32xf32>
    %14 = vector.shape_cast %13 : vector<32x32xf32> to vector<4x8x32xf32>
    %15 = vector.shape_cast %6 : vector<4x32xf32> to vector<4x1x32xf32>
    %16 = vector.broadcast %15 : vector<4x1x32xf32> to vector<4x8x32xf32>
    %17 = arith.addf %14, %16 : vector<4x8x32xf32>
    %18 = math.tanh %17 : vector<4x8x32xf32>
    %19 = vector.shape_cast %11 : vector<1x32xf32> to vector<1x1x32xf32>
    %20 = vector.broadcast %19 : vector<1x1x32xf32> to vector<4x8x32xf32>
    %21 = arith.mulf %18, %20 : vector<4x8x32xf32>
    %cst_11 = arith.constant dense<0.000000e+00> : vector<4x8xf32>
    %22 = vector.multi_reduction <add>, %21, %cst_11 [2] : vector<4x8x32xf32> to vector<4x8xf32>
    %cst_12 = arith.constant 5.000000e-01 : f32
    %23 = vector.broadcast %cst_12 : f32 to vector<4x8xf32>
    %24 = arith.cmpf ogt, %9, %23 : vector<4x8xf32>
    %cst_13 = arith.constant -1.000000e+30 : f32
    %25 = vector.broadcast %cst_13 : f32 to vector<4x8xf32>
    %26 = arith.select %24, %22, %25 : vector<4x8xi1>, vector<4x8xf32>
    %cst_14 = arith.constant dense<0xFF800000> : vector<4xf32>
    %27 = vector.multi_reduction <maximumf>, %26, %cst_14 [1] : vector<4x8xf32> to vector<4xf32>
    %28 = vector.shape_cast %27 : vector<4xf32> to vector<4x1xf32>
    %29 = vector.broadcast %28 : vector<4x1xf32> to vector<4x8xf32>
    %30 = arith.subf %26, %29 : vector<4x8xf32>
    %31 = math.exp %30 : vector<4x8xf32>
    %cst_15 = arith.constant dense<0.000000e+00> : vector<4xf32>
    %32 = vector.multi_reduction <add>, %31, %cst_15 [1] : vector<4x8xf32> to vector<4xf32>
    %33 = vector.shape_cast %32 : vector<4xf32> to vector<4x1xf32>
    %34 = vector.broadcast %33 : vector<4x1xf32> to vector<4x8xf32>
    %35 = arith.divf %31, %34 : vector<4x8xf32>
    %36 = vector.shape_cast %35 : vector<4x8xf32> to vector<4x8x1xf32>
    %37 = vector.broadcast %36 : vector<4x8x1xf32> to vector<4x8x32xf32>
    %38 = arith.mulf %37, %8 : vector<4x8x32xf32>
    %cst_16 = arith.constant dense<0.000000e+00> : vector<4x32xf32>
    %39 = vector.multi_reduction <add>, %38, %cst_16 [1] : vector<4x8x32xf32> to vector<4x32xf32>
    %c0_17 = arith.constant 0 : index
    %c0_18 = arith.constant 0 : index
    %c0_19 = arith.constant 0 : index
    %40 = vector.load %arg0[%c0_17, %c0_18, %c0_19] : memref<4x24x32xf32, #tpu.memory_space<vmem>>, vector<4x16x32xf32>
    %c0_20 = arith.constant 0 : index
    %c0_21 = arith.constant 0 : index
    %41 = vector.load %arg2[%c0_20, %c0_21] : memref<4x24xf32, #tpu.memory_space<vmem>>, vector<4x16xf32>
    %c32 = arith.constant 32 : index
    %c0_22 = arith.constant 0 : index
    %42 = vector.load %arg3[%c32, %c0_22] : memref<464x128xf32, #tpu.memory_space<vmem>>, vector<32x32xf32>
    %c450 = arith.constant 450 : index
    %c0_23 = arith.constant 0 : index
    %43 = vector.load %arg3[%c450, %c0_23] : memref<464x128xf32, #tpu.memory_space<vmem>>, vector<1x32xf32>
    %44 = vector.shape_cast %40 : vector<4x16x32xf32> to vector<64x32xf32>
    %cst_24 = arith.constant dense<0.000000e+00> : vector<64x32xf32>
    %45 = tpu.matmul %44, %42, %cst_24 {dimension_numbers = #tpu.dot_dimension_numbers<[1], [0], [0], [1], [0, 0, 1, 1], [], []>} : vector<64x32xf32>, vector<32x32xf32>, vector<64x32xf32> -> vector<64x32xf32>
    %46 = vector.shape_cast %45 : vector<64x32xf32> to vector<4x16x32xf32>
    %47 = vector.shape_cast %7 : vector<4x32xf32> to vector<4x1x32xf32>
    %48 = vector.broadcast %47 : vector<4x1x32xf32> to vector<4x16x32xf32>
    %49 = arith.addf %46, %48 : vector<4x16x32xf32>
    %50 = math.tanh %49 : vector<4x16x32xf32>
    %51 = vector.shape_cast %43 : vector<1x32xf32> to vector<1x1x32xf32>
    %52 = vector.broadcast %51 : vector<1x1x32xf32> to vector<4x16x32xf32>
    %53 = arith.mulf %50, %52 : vector<4x16x32xf32>
    %cst_25 = arith.constant dense<0.000000e+00> : vector<4x16xf32>
    %54 = vector.multi_reduction <add>, %53, %cst_25 [2] : vector<4x16x32xf32> to vector<4x16xf32>
    %cst_26 = arith.constant 5.000000e-01 : f32
    %55 = vector.broadcast %cst_26 : f32 to vector<4x16xf32>
    %56 = arith.cmpf ogt, %41, %55 : vector<4x16xf32>
    %cst_27 = arith.constant -1.000000e+30 : f32
    %57 = vector.broadcast %cst_27 : f32 to vector<4x16xf32>
    %58 = arith.select %56, %54, %57 : vector<4x16xi1>, vector<4x16xf32>
    %cst_28 = arith.constant dense<0xFF800000> : vector<4xf32>
    %59 = vector.multi_reduction <maximumf>, %58, %cst_28 [1] : vector<4x16xf32> to vector<4xf32>
    %60 = vector.shape_cast %59 : vector<4xf32> to vector<4x1xf32>
    %61 = vector.broadcast %60 : vector<4x1xf32> to vector<4x16xf32>
    %62 = arith.subf %58, %61 : vector<4x16xf32>
    %63 = math.exp %62 : vector<4x16xf32>
    %cst_29 = arith.constant dense<0.000000e+00> : vector<4xf32>
    %64 = vector.multi_reduction <add>, %63, %cst_29 [1] : vector<4x16xf32> to vector<4xf32>
    %65 = vector.shape_cast %64 : vector<4xf32> to vector<4x1xf32>
    %66 = vector.broadcast %65 : vector<4x1xf32> to vector<4x16xf32>
    %67 = arith.divf %63, %66 : vector<4x16xf32>
    %68 = vector.shape_cast %67 : vector<4x16xf32> to vector<4x16x1xf32>
    %69 = vector.broadcast %68 : vector<4x16x1xf32> to vector<4x16x32xf32>
    %70 = arith.mulf %69, %40 : vector<4x16x32xf32>
    %cst_30 = arith.constant dense<0.000000e+00> : vector<4x32xf32>
    %71 = vector.multi_reduction <add>, %70, %cst_30 [1] : vector<4x16x32xf32> to vector<4x32xf32>
    %72 = tpu.concatenate %39, %71 in 1 : vector<4x32xf32>, vector<4x32xf32> -> vector<4x64xf32>
    %c451 = arith.constant 451 : index
    %c0_31 = arith.constant 0 : index
    %73 = vector.load %arg3[%c451, %c0_31] : memref<464x128xf32, #tpu.memory_space<vmem>>, vector<1x64xf32>
    %74 = vector.broadcast %73 : vector<1x64xf32> to vector<4x64xf32>
    %75 = arith.mulf %72, %74 : vector<4x64xf32>
    %c452 = arith.constant 452 : index
    %c0_32 = arith.constant 0 : index
    %76 = vector.load %arg3[%c452, %c0_32] : memref<464x128xf32, #tpu.memory_space<vmem>>, vector<1x64xf32>
    %77 = vector.broadcast %76 : vector<1x64xf32> to vector<4x64xf32>
    %78 = arith.addf %75, %77 : vector<4x64xf32>
    %79 = vector.extract_strided_slice %78 {offsets = [0, 0], sizes = [4, 32], strides = [1, 1]} : vector<4x64xf32> to vector<4x32xf32>
    %80 = vector.extract_strided_slice %78 {offsets = [0, 32], sizes = [4, 32], strides = [1, 1]} : vector<4x64xf32> to vector<4x32xf32>
    %81 = arith.mulf %79, %80 : vector<4x32xf32>
    %82 = arith.addf %79, %80 : vector<4x32xf32>
    %83 = tpu.concatenate %78, %81, %82 in 1 : vector<4x64xf32>, vector<4x32xf32>, vector<4x32xf32> -> vector<4x128xf32>
    %c192 = arith.constant 192 : index
    %c0_33 = arith.constant 0 : index
    %84 = vector.load %arg3[%c192, %c0_33] : memref<464x128xf32, #tpu.memory_space<vmem>>, vector<128x128xf32>
    %cst_34 = arith.constant dense<0.000000e+00> : vector<4x128xf32>
    %85 = tpu.matmul %83, %84, %cst_34 {dimension_numbers = #tpu.dot_dimension_numbers<[1], [0], [0], [1], [0, 0, 1, 1], [], []>} : vector<4x128xf32>, vector<128x128xf32>, vector<4x128xf32> -> vector<4x128xf32>
    %c453 = arith.constant 453 : index
    %c0_35 = arith.constant 0 : index
    %86 = vector.load %arg3[%c453, %c0_35] : memref<464x128xf32, #tpu.memory_space<vmem>>, vector<1x128xf32>
    %87 = vector.broadcast %86 : vector<1x128xf32> to vector<4x128xf32>
    %88 = arith.mulf %85, %87 : vector<4x128xf32>
    %c454 = arith.constant 454 : index
    %c0_36 = arith.constant 0 : index
    %89 = vector.load %arg3[%c454, %c0_36] : memref<464x128xf32, #tpu.memory_space<vmem>>, vector<1x128xf32>
    %90 = vector.broadcast %89 : vector<1x128xf32> to vector<4x128xf32>
    %91 = arith.addf %88, %90 : vector<4x128xf32>
    %cst_37 = arith.constant 0.000000e+00 : f32
    %92 = vector.broadcast %cst_37 : f32 to vector<4x128xf32>
    %93 = arith.maximumf %91, %92 : vector<4x128xf32>
    %c320 = arith.constant 320 : index
    %c0_38 = arith.constant 0 : index
    %94 = vector.load %arg3[%c320, %c0_38] : memref<464x128xf32, #tpu.memory_space<vmem>>, vector<128x128xf32>
    %cst_39 = arith.constant dense<0.000000e+00> : vector<4x128xf32>
    %95 = tpu.matmul %93, %94, %cst_39 {dimension_numbers = #tpu.dot_dimension_numbers<[1], [0], [0], [1], [0, 0, 1, 1], [], []>} : vector<4x128xf32>, vector<128x128xf32>, vector<4x128xf32> -> vector<4x128xf32>
    %c455 = arith.constant 455 : index
    %c0_40 = arith.constant 0 : index
    %96 = vector.load %arg3[%c455, %c0_40] : memref<464x128xf32, #tpu.memory_space<vmem>>, vector<1x128xf32>
    %97 = vector.broadcast %96 : vector<1x128xf32> to vector<4x128xf32>
    %98 = arith.mulf %95, %97 : vector<4x128xf32>
    %c456 = arith.constant 456 : index
    %c0_41 = arith.constant 0 : index
    %99 = vector.load %arg3[%c456, %c0_41] : memref<464x128xf32, #tpu.memory_space<vmem>>, vector<1x128xf32>
    %100 = vector.broadcast %99 : vector<1x128xf32> to vector<4x128xf32>
    %101 = arith.addf %98, %100 : vector<4x128xf32>
    %cst_42 = arith.constant 0.000000e+00 : f32
    %102 = vector.broadcast %cst_42 : f32 to vector<4x128xf32>
    %103 = arith.maximumf %101, %102 : vector<4x128xf32>
    %c0_43 = arith.constant 0 : index
    %c0_44 = arith.constant 0 : index
    %104 = vector.load %arg4[%c0_43, %c0_44] : memref<4x128xf32, #tpu.memory_space<vmem>>, vector<4x128xf32>
    tpu.vector_store %arg4[%c0_43, %c0_44], %103 {strides = array<i32>} : memref<4x128xf32, #tpu.memory_space<vmem>>, vector<4x128xf32>,
    return
  }
}

</mosaic_0001>

<bundles_post_ra>
// kernel: tpu_custom_call.1
= control target key start
LH: loop header
LB: loop body
LE: loop exit
PB: predicated region body
PF: predicated region fallthrough
CT: control target
= control target key end

     0   :  { %9 = vsyncpa [#allocation3], 0  ;;  %s1713_s0 = inlined_call_operand.hbm [shape: f32[4,24,32], index: 0, kind: input, shape index: {}]   ;;  %s1714_s1 = inlined_call_operand.hbm [shape: f32[4,128], index: 1, kind: input, shape index: {}]   ;;  %s1715_s2 = inlined_call_operand.hbm [shape: f32[4,24], index: 2, kind: input, shape index: {}]   ;;  %s1716_s3 = inlined_call_operand.hbm [shape: f32[464,128], index: 3, kind: input, shape index: {}]   ;;  %s1717_s4 = inlined_call_operand.hbm [shape: f32[4,128], index: 4, kind: output, shape index: {}]  }
   0x1   :  { %10 = vsyncpa [#allocation6], 0 }
   0x2   :  { %11 = vsyncpa [#allocation9], 0 }
   0x3   :  { %12 = vsyncpa [#allocation4], 0  ;;  %s1464_s15 = smov [#allocation5]   ;;  %s1465_s17 = smov [#allocation2]  }
   0x4   :  { %s31_s16 = sshll.u32 %s1464_s15, 4  ;;  %s18_s18 = sshll.u32 %s1465_s17, 4  ;;  %s32_s16 = int_to_ptr.vmem [resolvable:$true] %s31_s16  ;;  %s19_s18 = int_to_ptr.vmem [resolvable:$true] %s18_s18 }
   0x5   :  { %s1364_s19 = scalar_lea.vmem %s32_s16, 64  ;;  %p1369_p1 = scmp.lt.s32.totalorder %s32_s16, %s32_s16 }
   0x6   :  { %p1365_p0 = scmp.ne.s32.totalorder %s32_s16, %s1364_s19  ;;  %p1370_p2 = scmp.lt.s32.totalorder %s1364_s19, %s1364_s19 }
   0x8   :  { %p1371_p3 = por %p1370_p2, %p1369_p1 }
   0xa   :  { %p1372_p4 = pnand %p1371_p3, %p1365_p0 }
   0xc   :  { %1375 = shalt.err (!%p1372_p4)
}
   0xd   :  { %34 = dma.hbm_to_vmem [thread:$0]  %s1714_s1, 64, %s32_s16, [#allocation6]  }
   0xe   :  { %s1384_s22 = scalar_lea.vmem %s19_s18, 1536  ;;  %p1389_p6 = scmp.lt.s32.totalorder %s19_s18, %s19_s18 }
   0xf   :  { %p1385_p5 = scmp.ne.s32.totalorder %s19_s18, %s1384_s22  ;;  %p1390_p7 = scmp.lt.s32.totalorder %s1384_s22, %s1384_s22 }
  0x11   :  { %p1391_p8 = por %p1390_p7, %p1389_p6 }
  0x13   :  { %p1392_p9 = pnand %p1391_p8, %p1385_p5 }
  0x15   :  { %1395 = shalt.err (!%p1392_p9)
}
  0x16   :  { %s1466_s23 = smov 128   ;;  %s1467_s24 = smov 8  }
  0x17   :  { %24 = dma.hbm_to_vmem [thread:$0]  %s1713_s0, 1536, %s19_s18, [#allocation3], %s1466_s23, %s1466_s23, %s1467_s24  }
  0x18   :  { %s1468_s27 = smov [#allocation7]   ;;  %s1469_s29 = smov [#allocation8]  }
  0x19   :  { %s41_s28 = sshll.u32 %s1468_s27, 4  ;;  %s50_s30 = sshll.u32 %s1469_s29, 4  ;;  %s42_s28 = int_to_ptr.vmem [resolvable:$true] %s41_s28  ;;  %s51_s30 = int_to_ptr.vmem [resolvable:$true] %s50_s30 }
  0x1a   :  { %s1404_s1 = scalar_lea.vmem %s42_s28, 64  ;;  %p1409_p11 = scmp.lt.s32.totalorder %s42_s28, %s42_s28 }
  0x1b   :  { %p1405_p10 = scmp.ne.s32.totalorder %s42_s28, %s1404_s1  ;;  %p1410_p12 = scmp.lt.s32.totalorder %s1404_s1, %s1404_s1 }
  0x1d   :  { %p1411_p13 = por %p1410_p12, %p1409_p11 }
  0x1f   :  { %p1412_p0 = pnand %p1411_p13, %p1405_p10 }
  0x21   :  { %1415 = shalt.err (!%p1412_p0)
}
  0x22   :  { %44 = dma.hbm_to_vmem [thread:$0]  %s1715_s2, 64, %s42_s28, [#allocation6]  }
  0x23   :  { %s1424_s7 = scalar_lea.vmem %s51_s30, 7424  ;;  %p1429_p2 = scmp.lt.s32.totalorder %s51_s30, %s51_s30 }
  0x24   :  { %p1425_p1 = scmp.ne.s32.totalorder %s51_s30, %s1424_s7  ;;  %p1430_p3 = scmp.lt.s32.totalorder %s1424_s7, %s1424_s7 }
  0x26   :  { %p1431_p4 = por %p1430_p3, %p1429_p2 }
  0x28   :  { %p1432_p5 = pnand %p1431_p4, %p1425_p1 }
  0x2a   :  { %1435 = shalt.err (!%p1432_p5)
}
  0x2b   :  { %56 = dma.hbm_to_vmem [thread:$0]  %s1716_s3, 7424, %s51_s30, [#allocation9], %s1466_s23, %s1466_s23, %s1467_s24  }
  0x2c   :  { %1456 = dma.done.wait [#allocation3], 1536  }
  0x2d   :  { %1457 = vsyncadd [#allocation3], 4294965760 }
  0x2e   :  { %1458 = dma.done.wait [#allocation6], 128  }
  0x2f   :  { %1459 = vsyncadd [#allocation6], 4294967168 }
  0x30   :  { %1460 = dma.done.wait [#allocation9], 7424  }
  0x31   :  { %1461 = vsyncadd [#allocation9], 4294959872  ;;  %v1470_v0 = vmov 0.0   ;;  %vm1471_vm0 = vmmov 0   ;;  %v85_v1 = vld [vmem:[#allocation8 + $0xb8] sm:$0xff]  ;;  %v84_v2 = vld [vmem:[#allocation8 + $0xb0] sm:$0xff]  ;;  %v273_v40 = vlaneseq }
  0x32   :  { %1171 = vmatprep.subr.mxu0 %v1470_v0  ;;  %1203 = vmatprep.mubr.msk.f32.mxu0 %vm1471_vm0, %v1470_v0  ;;  %v83_v3 = vld [vmem:[#allocation8 + $0xa8] sm:$0xff]  ;;  %v82_v4 = vld [vmem:[#allocation8 + $0xa0] sm:$0xff]  ;;  %v169_v5 = vld [vmem:[#allocation8 + $0x18] sm:$0xff]  ;;  %vm171_vm1 = vcmask 261120   ;;  %v1472_v38 = vmov 1966171168  }
  0x33   :  { %1172 = vmatpush3.msra.mxu0 %v85_v1  ;;  %1206 = vmatprep.subr.mxu1 %v169_v5  ;;  %v168_v6 = vld [vmem:[#allocation8 + $0x10] sm:$0xff]  ;;  %v81_v7 = vld [vmem:[#allocation8 + $0x98] sm:$0xff]  ;;  %v167_v8 = vld [vmem:[#allocation8 + $0x8] sm:$0xff]  ;;  %v271_v39 = vunpack.c.l.s4 %v1472_v38  ;;  %v1588_v42 = vshrl.u32 %v273_v40, 7  ;;  %s1473_s2 = smov 96   ;;  %vm680_vm2 = vcmask 130112  }
  0x34   :  { %1173 = vmatprep.subr.mxu0 %v1470_v0  ;;  %1207 = vmatpush3.msra.mxu1 %v169_v5  ;;  %v80_v9 = vld [vmem:[#allocation8 + $0x90] sm:$0xff]  ;;  %v166_v10 = vld [vmem:[#allocation8] sm:$0xff]  ;;  %v79_v11 = vld [vmem:[#allocation8 + $0x88] sm:$0xff]  ;;  %vm366_vm3 = vcmask 1041409   ;;  %vm368_vm4 = vcmask 1042434   ;;  %vm370_vm5 = vcmask 1043459  }
  0x35   :  { %1174 = vmatpush3.msra.mxu0 %v84_v2  ;;  %1208 = vmatprep.subr.mxu1 %v168_v6  ;;  %v1523_v12 = vld [vmem:[#allocation2 + $0x10] sm:$0xff]  ;;  %v1525_v13 = vld [vmem:[#allocation2 + $0x28] sm:$0xff]  ;;  %v1528_v15 = vld [vmem:[#allocation2 + $0x40] sm:$0xff]  ;;  %v272_v41 = vunpack.c.0.s8 %v271_v39  ;;  %v1592_v51 = vsub.s32 0, %v1588_v42  ;;  %vm714_vm7 = vcmask 125952   ;;  %vm374_vm9 = vcmask 191616  }
  0x36   :  { %1175 = vmatprep.subr.mxu0 %v1470_v0  ;;  %1209 = vmatpush3.msra.mxu1 %v168_v6  ;;  %v78_v14 = vld [vmem:[#allocation8 + $0x80] sm:$0xff]  ;;  %v467_v16 = vld [vmem:[#allocation8 + $0x38] sm:$0xff]  ;;  %v1537_v18 = vld [vmem:[#allocation2 + $0x58] sm:$0xff]  ;;  %s1474_s3 = smov 112   ;;  %vm385_vm10 = vcmask 60416   ;;  %s1475_s9 = smov 32  }
  0x37   :  { %1176 = vmatpush3.msra.mxu0 %v83_v3  ;;  %1210 = vmatprep.subr.mxu1 %v167_v8  ;;  %v77_v17 = vld [vmem:[#allocation8 + $0x78] sm:$0xff]  ;;  %v76_v19 = vld [vmem:[#allocation8 + $0x70] sm:$0xff]  ;;  %v75_v21 = vld [vmem:[#allocation8 + $0x68] sm:$0xff]  ;;  %v275_v45 = vsub.s32 %v272_v41, %v1588_v42  ;;  %s1476_s10 = smov 64   ;;  %vm859_vm11 = vcmask 523264   ;;  %vm861_vm12 = vcmask 785408  }
  0x38   :  { %1177 = vmatprep.subr.mxu0 %v1470_v0  ;;  %1211 = vmatpush3.msra.mxu1 %v167_v8  ;;  %v466_v20 = vld [vmem:[#allocation8 + $0x30] sm:$0xff]  ;;  %v465_v22 = vld [vmem:[#allocation8 + $0x28] sm:$0xff]  ;;  %v74_v23 = vld [vmem:[#allocation8 + $0x60] sm:$0xff]  ;;  %s1477_s11 = smov [#allocation10]  }
  0x39   :  { %1178 = vmatpush3.msra.mxu0 %v82_v4  ;;  %1212 = vmatprep.subr.mxu1 %v166_v10  ;;  %v464_v24 = vld [vmem:[#allocation8 + $0x20] sm:$0xff]  ;;  %v73_v25 = vld [vmem:[#allocation8 + $0x58] sm:$0xff]  ;;  %v72_v28 = vld [vmem:[#allocation8 + $0x50] sm:$0xff]  ;;  %s1068_s12 = sshll.u32 %s1477_s11, 4  ;;  %s1069_s12 = int_to_ptr.vmem [resolvable:$true] %s1068_s12 }
  0x3a   :  { %1179 = vmatprep.subr.mxu0 %v1470_v0  ;;  %1213 = vmatpush3.msra.mxu1 %v166_v10  ;;  %v1545_v26 = vld [vmem:[#allocation2] sm:$0xff]  ;;  %v1547_v27 = vld [vmem:[#allocation2 + $0x8] sm:$0xff]  ;;  %v1550_v29 = vld [vmem:[#allocation2 + $0x18] sm:$0xff]  ;;  %s1436_s13 = scalar_lea.vmem %s1069_s12, 64  ;;  %p1441_p7 = scmp.lt.s32.totalorder %s1069_s12, %s1069_s12 }
  0x3b   :  { %1180 = vmatpush3.msra.mxu0 %v81_v7  ;;  %1214 = vmatprep.mubr.msk.f32.mxu1 %vm171_vm1, %v1523_v12  ;;  %v71_v30 = vld [vmem:[#allocation8 + $0x48] sm:$0xff]  ;;  %v1559_v31 = vld [vmem:[#allocation2 + $0x20] sm:$0xff]  ;;  %v70_v32 = vld [vmem:[#allocation8 + $0x40] sm:$0xff]  ;;  %p1437_p6 = scmp.ne.s32.totalorder %s1069_s12, %s1436_s13  ;;  %p1442_p8 = scmp.lt.s32.totalorder %s1436_s13, %s1436_s13 }
  0x3c   :  { %1181 = vmatprep.subr.mxu0 %v1470_v0  ;;  %1215 = vmatmul.mubr.msk.f32.vlgmr.msra.gmra.mxu1 %vm171_vm1, %v1525_v13  ;;  %v1562_v33 = vld [vmem:[#allocation2 + $0x30] sm:$0xff]  ;;  %v69_v34 = vld [vmem:[#allocation5] sm:$0xf]  ;;  %v1570_v35 = vld [vmem:[#allocation2 + $0x38] sm:$0xff] }
  0x3d   :  { %1182 = vmatpush3.msra.mxu0 %v80_v9  ;;  %1217 = vmatprep.mubr.msk.f32.mxu1 %vm171_vm1, %v1528_v15  ;;  %v1572_v36 = vld [vmem:[#allocation2 + $0x48] sm:$0xff]  ;;  %v1581_v37 = vld [vmem:[#allocation2 + $0x50] sm:$0xff]  ;;  %p1443_p9 = por %p1442_p8, %p1441_p7 }
  0x3e   :  { %1183 = vmatprep.subr.mxu0 %v1470_v0  ;;  %1220 = vmatprep.subr.mxu1 %v467_v16  ;;  %v1079_v44 = vld [vmem:[#allocation8 + $0x1c0] ss:$0 sm:$0xff]  ;;  %v1084_v5 = vld [vmem:[#allocation8 + $0x1c1] ss:$0 sm:$0xff] }
  0x3f   :  { %1184 = vmatpush3.msra.mxu0 %v79_v11  ;;  %1221 = vmatpush3.msra.mxu1 %v467_v16  ;;  %p1444_p10 = pnand %p1443_p9, %p1437_p6 }
  0x40   :  { %1185 = vmatprep.subr.mxu0 %v1470_v0  ;;  %1218 = vmatmul.mubr.msk.f32.gmra.mxu1 %vm171_vm1, %v1537_v18 }
  0x41   :  { %1186 = vmatpush3.msra.mxu0 %v78_v14  ;;  %1222 = vmatprep.subr.mxu1 %v466_v20 }
  0x42   :  { %1187 = vmatprep.subr.mxu0 %v1470_v0  ;;  %1223 = vmatpush3.msra.mxu1 %v466_v20 }
  0x43   :  { %1188 = vmatpush3.msra.mxu0 %v77_v17  ;;  %1224 = vmatprep.subr.mxu1 %v465_v22 }
  0x44   :  { %1189 = vmatprep.subr.mxu0 %v1470_v0  ;;  %1225 = vmatpush3.msra.mxu1 %v465_v22 }
  0x45   :  { %1190 = vmatpush3.msra.mxu0 %v76_v19  ;;  %1226 = vmatprep.subr.mxu1 %v464_v24 }
  0x46   :  { %1191 = vmatprep.subr.mxu0 %v1470_v0  ;;  %1227 = vmatpush3.msra.mxu1 %v464_v24 }
  0x47   :  { %1192 = vmatpush3.msra.mxu0 %v75_v21  ;;  %1228 = vmatprep.mubr.msk.f32.mxu1 %vm171_vm1, %v1545_v26 }
  0x48   :  { %1193 = vmatprep.subr.mxu0 %v1470_v0  ;;  %1229 = vmatmul.mubr.msk.f32.vlgmr.msra.gmra.mxu1 %vm171_vm1, %v1547_v27 }
  0x49   :  { %1194 = vmatpush3.msra.mxu0 %v74_v23  ;;  %1231 = vmatprep.mubr.msk.f32.mxu1 %vm171_vm1, %v1550_v29 }
  0x4a   :  { %1195 = vmatprep.subr.mxu0 %v1470_v0  ;;  %1240 = vmatprep.subr.mxu1 %v1470_v0 }
  0x4b   :  { %1196 = vmatpush3.msra.mxu0 %v73_v25 }
  0x4c   :  { %1197 = vmatprep.subr.mxu0 %v1470_v0  ;;  %1232 = vmatmul.mubr.msk.f32.gmra.mxu1 %vm171_vm1, %v1559_v31 }
  0x4d   :  { %1198 = vmatpush3.msra.mxu0 %v72_v28  ;;  %1234 = vmatprep.mubr.msk.f32.mxu1 %vm171_vm1, %v1562_v33 }
  0x4e   :  { %1199 = vmatprep.subr.mxu0 %v1470_v0 }
  0x4f   :  { %1200 = vmatpush3.msra.mxu0 %v71_v30 }
  0x50   :  { %1201 = vmatprep.subr.mxu0 %v1470_v0  ;;  %1235 = vmatmul.mubr.msk.f32.gmra.mxu1 %vm171_vm1, %v1570_v35 }
  0x51   :  { %1202 = vmatpush3.msra.mxu0 %v70_v32  ;;  %1237 = vmatprep.mubr.msk.f32.mxu1 %vm171_vm1, %v1572_v36 }
  0x52   :  { %1204 = vmatmul.mubr.f32.vlgmr.msra.gmra.mxu0 %v69_v34  ;;  %1275 = vmatprep.subr.mxu0 %v1470_v0 }
  0x53   :  { %1307 = vmatprep.mubr.msk.f32.mxu0 %vm1471_vm0, %v1470_v0 }
  0x54   :  { %1238 = vmatmul.mubr.msk.f32.gmra.mxu1 %vm171_vm1, %v1581_v37 }
  0x55   :  { %1272 = vmatprep.mubr.msk.f32.mxu1 %vm1471_vm0, %v1470_v0 }
  0xfc   :  { %v1216_v43 = vpop.f32.mrf.mxu1 }
  0xfe   :  { %v250_v47 = vpop.f32.mrf.mxu1 }
 0x100   :  { %v1219_v52 = vpop.f32.mrf.mxu1 }
 0x102   :  { %v260_v58 = vpop.f32.mrf.mxu1 }
 0x108   :  { %v1230_v19 = vpop.f32.mrf.mxu1 }
 0x10a   :  { %v559_v20 = vpop.f32.mrf.mxu1 }
 0x10c   :  { %v1233_v21 = vpop.f32.mrf.mxu1 }
 0x10e   :  { %v569_v22 = vpop.f32.mrf.mxu1 }
 0x110   :  { %v1236_v23 = vpop.f32.mrf.mxu1 }
 0x112   :  { %v157_v46 = vpop.f32.mrf.mxu0  ;;  %v579_v24 = vpop.f32.mrf.mxu1 }
 0x113   :  { %v158_v48 = vadd.f32 %v1079_v44, %v157_v46 }
 0x114   :  { %v1205_v49 = vpop.f32.mrf.mxu0  ;;  %v1239_v28 = vpop.f32.mrf.mxu1 }
 0x115   :  { %v276_v50 = vrot.slane %v158_v48, %v275_v45  ;;  %v1093_v49 = vld [vmem:[#allocation8 + $0x1c2] ss:$0 sm:$0xff] }
 0x116   :  { %v589_v41 = vpop.f32.mrf.mxu1 }
 0x117   :  { %v277_v53 = vcombine.high %v276_v50, %v276_v50  ;;  %v284_v54 = vrot.slane %v276_v50, %v275_v45 }
 0x119   :  { %v291_v55 = vrot.slane %v277_v53, %v275_v45  ;;  %v297_v56 = vrot.slane %v284_v54, %v1592_v51  ;;  %v292_v57 = vcombine.high %v284_v54, %v284_v54 }
 0x11b   :  { %v293_v59 = vcombine.high %v291_v55, %v291_v55  ;;  %598 = vrot.lane.b32.xlu0 %v297_v56, %s1473_s2  ;;  %v305_v60 = vrot.slane %v292_v57, %v1592_v51  ;;  %v301_v61 = vrot.slane %v291_v55, %v1592_v51  ;;  %v314_v3 = vadd.f32 %v297_v56, %v250_v47 }
 0x11d   :  { %v309_v62 = vrot.slane %v293_v59, %v1592_v51  ;;  %v316_v63 = vadd.f32 %v305_v60, %v260_v58  ;;  %602 = vrot.lane.b32.xlu1 %v305_v60, %s1473_s2  ;;  %v315_v2 = vadd.f32 %v1216_v43, %v301_v61 }
 0x11f   :  { %v317_v1 = vadd.f32 %v1219_v52, %v309_v62  ;;  %600 = vrot.lane.b32.xlu0 %v301_v61, %s1473_s2  ;;  %1324 = vtanh.f32 %v316_v63 }
 0x121   :  { %1326 = vtanh.f32 %v317_v1  ;;  %604 = vrot.lane.b32.xlu1 %v309_v62, %s1473_s2 }
 0x122   :  { %1328 = vtanh.f32 %v315_v2 }
 0x123   :  { %1330 = vtanh.f32 %v314_v3 }
 0x12c   :  { %v1325_v4 = vpop.eup %1324 }
 0x12d   :  { %v1602_v7 = vmul.f32 %v1325_v4, %v1084_v5 }
 0x12e   :  { %v1327_v6 = vpop.eup %1326 }
 0x12f   :  { %v1604_v8 = vmul.f32 %v1327_v6, %v1084_v5  ;;  %v1329_v9 = vpop.eup %1328 }
 0x130   :  { %v327_v10 = vmul.f32 %v1329_v9, %v1084_v5  ;;  %v1331_v11 = vpop.eup %1330 }
 0x131   :  { %v326_v16 = vmul.f32 %v1331_v11, %v1084_v5 }
 0x132   :  { %v333_v14 = vsel %vm171_vm1, %v327_v10, 0.0 }
 0x133   :  { %v330_v17 = vsel %vm171_vm1, %v326_v16, 0.0  ;;  %v336_v16 = vsel %vm171_vm1, %v1602_v7, 0.0 }
 0x13e   :  { %334 = vadd.xlane.f32.xlu0 %v333_v14 }
 0x145   :  { %331 = vadd.xlane.f32.xlu1 %v330_v17 }
 0x18d   :  { %v599_v25 = vpop.permute.xlu0 %598 }
 0x18e   :  { %v610_v30 = vadd.f32 %v599_v25, %v559_v20  ;;  %v611_v32 = vadd.f32 %v1230_v19, %v599_v25  ;;  %v339_v19 = vsel %vm171_vm1, %v1604_v8, 0.0 }
 0x18f   :  { %v603_v34 = vpop.permute.xlu1 %602 }
 0x190   :  { %1332 = vtanh.f32 %v610_v30  ;;  %v614_v38 = vadd.f32 %v603_v34, %v579_v24  ;;  %v615_v46 = vadd.f32 %v1236_v23, %v603_v34  ;;  %v348_v24 = vand.u32 127, %v273_v40 }
 0x191   :  { %1334 = vtanh.f32 %v611_v32  ;;  %v601_v39 = vpop.permute.xlu0 %600 }
 0x192   :  { %1336 = vtanh.f32 %v614_v38  ;;  %v612_v43 = vadd.f32 %v601_v39, %v569_v22  ;;  %v613_v44 = vadd.f32 %v1233_v21, %v601_v39  ;;  %v673_v7 = vsub.s32 %v348_v24, %v1588_v42 }
 0x193   :  { %v605_v45 = vpop.permute.xlu1 %604  ;;  %v349_v39 = vadd.s32 4294967280, %v348_v24 }
 0x194   :  { %1338 = vtanh.f32 %v612_v43  ;;  %v616_v47 = vadd.f32 %v605_v45, %v589_v41  ;;  %v617_v48 = vadd.f32 %v1239_v28, %v605_v45  ;;  %v675_v28 = vadd.s32 4294967288, %v348_v24 }
 0x195   :  { %1340 = vtanh.f32 %v613_v44  ;;  %v352_v40 = vsub.s32 %v349_v39, %v1588_v42  ;;  %v401_v39 = vsub.s32 1, %v1588_v42 }
 0x196   :  { %1342 = vtanh.f32 %v616_v47  ;;  %v678_v34 = vsub.s32 %v675_v28, %v1588_v42 }
 0x197   :  { %1344 = vtanh.f32 %v615_v46 }
 0x198   :  { %1346 = vtanh.f32 %v617_v48 }
 0x19d   :  { %v1333_v50 = vpop.eup %1332 }
 0x19e   :  { %v1335_v52 = vpop.eup %1334  ;;  %v630_v53 = vmul.f32 %v1333_v50, %v1093_v49  ;;  %v463_v50 = vld [vmem:[#allocation7] sm:$0xf] }
 0x19f   :  { %v1337_v54 = vpop.eup %1336  ;;  %v631_v55 = vmul.f32 %v1335_v52, %v1093_v49  ;;  %vm662_vm6 = vcmp.gt.f32.partialorder %v463_v50, 0.5 }
 0x1a0   :  { %v638_v56 = vsel %vm171_vm1, %v630_v53, 0.0  ;;  %v634_v59 = vmul.f32 %v1337_v54, %v1093_v49 }
 0x1a1   :  { %v1339_v57 = vpop.eup %1338  ;;  %639 = vadd.xlane.f32.xlu0 %v638_v56  ;;  %v641_v58 = vsel %vm171_vm1, %v631_v55, 0.0 }
 0x1a2   :  { %v1341_v60 = vpop.eup %1340  ;;  %642 = vadd.xlane.f32.xlu1 %v641_v58  ;;  %v632_v61 = vmul.f32 %v1339_v57, %v1093_v49  ;;  %v650_v3 = vsel %vm171_vm1, %v634_v59, 0.0 }
 0x1a3   :  { %v1343_v62 = vpop.eup %1342  ;;  %v633_v1 = vmul.f32 %v1341_v60, %v1093_v49  ;;  %v165_v60 = vld [vmem:[#allocation7] sm:$0xf] }
 0x1a4   :  { %v644_v63 = vsel %vm171_vm1, %v632_v61, 0.0  ;;  %v1345_v2 = vpop.eup %1344  ;;  %v636_v4 = vmul.f32 %v1343_v62, %v1093_v49  ;;  %vm342_vm8 = vcmp.gt.f32.partialorder %v165_v60, 0.5 }
 0x1a5   :  { %645 = vadd.xlane.f32.xlu0 %v644_v63  ;;  %v647_v5 = vsel %vm171_vm1, %v633_v1, 0.0  ;;  %v635_v6 = vmul.f32 %v1345_v2, %v1093_v49  ;;  %v1347_v9 = vpop.eup %1346 }
 0x1a6   :  { %651 = vadd.xlane.f32.xlu1 %v650_v3  ;;  %v656_v10 = vsel %vm171_vm1, %v636_v4, 0.0  ;;  %v637_v14 = vmul.f32 %v1347_v9, %v1093_v49 }
 0x1a7   :  { %v653_v11 = vsel %vm171_vm1, %v635_v6, 0.0 }
 0x1a8   :  { %v659_v17 = vsel %vm171_vm1, %v637_v14, 0.0 }
 0x1a9   :  { %648 = vadd.xlane.f32.xlu0 %v647_v5 }
 0x1aa   :  { %657 = vadd.xlane.f32.xlu1 %v656_v10 }
 0x1ad   :  { %654 = vadd.xlane.f32.xlu0 %v653_v11 }
 0x1ae   :  { %337 = vadd.xlane.f32.xlu1 %v336_v16 }
 0x1b1   :  { %660 = vadd.xlane.f32.xlu0 %v659_v17 }
 0x1b5   :  { %340 = vadd.xlane.f32.xlu0 %v339_v19 }
 0x1c7   :  { %v335_v20 = vpop.xlane.xlu0 %334 }
 0x1c8   :  { %v357_v61 = vrot.slane %v335_v20, %v352_v40 }
 0x1ce   :  { %v332_v21 = vpop.xlane.xlu1 %331 }
 0x1cf   :  { %v353_v54 = vrot.slane %v332_v21, %v352_v40 }
 0x1d1   :  { %v367_v3 = vsel %vm366_vm3, %v357_v61, %v353_v54 }
 0x22a   :  { %v640_v22 = vpop.xlane.xlu0 %639 }
 0x22b   :  { %v643_v23 = vpop.xlane.xlu1 %642  ;;  %v674_v8 = vrot.slane %v640_v22, %v673_v7 }
 0x22c   :  { %v679_v44 = vrot.slane %v643_v23, %v678_v34 }
 0x22e   :  { %v646_v25 = vpop.xlane.xlu0 %645  ;;  %v681_v55 = vsel %vm680_vm2, %v679_v44, %v674_v8  ;;  %v417_v44 = vsub.s32 3, %v1588_v42 }
 0x22f   :  { %v652_v30 = vpop.xlane.xlu1 %651  ;;  %v685_v45 = vrot.slane %v646_v25, %v673_v7 }
 0x230   :  { %v694_v47 = vrot.slane %v652_v30, %v673_v7 }
 0x232   :  { %v649_v32 = vpop.xlane.xlu0 %648 }
 0x233   :  { %v658_v38 = vpop.xlane.xlu1 %657  ;;  %v689_v41 = vrot.slane %v649_v32, %v678_v34 }
 0x234   :  { %v703_v56 = vrot.slane %v658_v38, %v673_v7 }
 0x235   :  { %v690_v48 = vsel %vm680_vm2, %v689_v41, %v685_v45 }
 0x236   :  { %v655_v43 = vpop.xlane.xlu0 %654  ;;  %v709_v59 = vsel %vm366_vm3, %v690_v48, %v681_v55 }
 0x237   :  { %v698_v46 = vrot.slane %v655_v43, %v678_v34  ;;  %v338_v49 = vpop.xlane.xlu1 %337  ;;  %v409_v43 = vsub.s32 2, %v1588_v42 }
 0x238   :  { %v361_v58 = vrot.slane %v338_v49, %v352_v40 }
 0x239   :  { %v699_v52 = vsel %vm680_vm2, %v698_v46, %v694_v47 }
 0x23a   :  { %v661_v53 = vpop.xlane.xlu0 %660  ;;  %v710_v63 = vsel %vm368_vm4, %v699_v52, %v709_v59  ;;  %v369_v9 = vsel %vm368_vm4, %v361_v58, %v367_v3 }
 0x23b   :  { %v707_v57 = vrot.slane %v661_v53, %v678_v34 }
 0x23d   :  { %v708_v62 = vsel %vm680_vm2, %v707_v57, %v703_v56 }
 0x23e   :  { %v341_v1 = vpop.xlane.xlu0 %340  ;;  %v711_v2 = vsel %vm370_vm5, %v708_v62, %v710_v63 }
 0x23f   :  { %v365_v4 = vrot.slane %v341_v1, %v352_v40  ;;  %v713_v5 = vsel %vm662_vm6, %v711_v2, -1e+30 }
 0x240   :  { %v715_v6 = vsel %vm714_vm7, %v713_v5, -inf }
 0x241   :  { %716 = vmax.xlane.f32.xlu1 %v715_v6  ;;  %v371_v10 = vsel %vm370_vm5, %v365_v4, %v369_v9 }
 0x242   :  { %v373_v11 = vsel %vm342_vm8, %v371_v10, -1e+30 }
 0x243   :  { %v375_v14 = vsel %vm374_vm9, %v373_v11, -inf }
 0x244   :  { %376 = vmax.xlane.f32.xlu0 %v375_v14 }
 0x2ca   :  { %v717_v16 = vpop.xlane.xlu1 %716 }
 0x2cb   :  { %v718_v17 = vsub.f32 %v713_v5, %v717_v16 }
 0x2cd   :  { %v719_v19 = vmul.f32 1.442695, %v718_v17  ;;  %v377_v20 = vpop.xlane.xlu0 %376 }
 0x2ce   :  { %v378_v21 = vsub.f32 %v373_v11, %v377_v20 }
 0x2cf   :  { %1348 = vpow2.f32 %v719_v19 }
 0x2d0   :  { %v379_v22 = vmul.f32 1.442695, %v378_v21 }
 0x2d2   :  { %1350 = vpow2.f32 %v379_v22 }
 0x2dc   :  { %v1349_v23 = vpop.eup %1348 }
 0x2dd   :  { %v721_v24 = vsel %vm714_vm7, %v1349_v23, 0.0 }
 0x2de   :  { %722 = vadd.xlane.f32.xlu1 %v721_v24 }
 0x2df   :  { %v1351_v25 = vpop.eup %1350 }
 0x2e0   :  { %382 = vrot.lane.b32.xlu0 %v1351_v25, %s1474_s3 }
 0x352   :  { %v383_v28 = vpop.permute.xlu0 %382 }
 0x353   :  { %v386_v30 = vsel %vm385_vm10, %v383_v28, 0.0 }
 0x354   :  { %387 = vadd.xlane.f32.xlu1 %v386_v30 }
 0x367   :  { %v723_v32 = vpop.xlane.xlu1 %722 }
 0x368   :  { %1352 = vrcp.f32 %v723_v32 }
 0x375   :  { %v1353_v7 = vpop.eup %1352 }
 0x376   :  { %v725_v34 = vmul.f32 %v1353_v7, %v1349_v23 }
 0x378   :  { %v729_v38 = vrot.slane %v725_v34, %v1592_v51  ;;  %v740_v41 = vrot.slane %v725_v34, %v401_v39  ;;  %v751_v8 = vrot.slane %v725_v34, %v409_v43  ;;  %v762_v45 = vrot.slane %v725_v34, %v417_v44 }
 0x37a   :  { %735 = vbcast.lane.b32.xlu0 %v729_v38, 264  ;;  %731 = vbcast.lane.b32.xlu1 %v729_v38, 256 }
 0x37e   :  { %746 = vbcast.lane.b32.xlu0 %v740_v41, 264  ;;  %742 = vbcast.lane.b32.xlu1 %v740_v41, 256 }
 0x382   :  { %757 = vbcast.lane.b32.xlu0 %v751_v8, 264  ;;  %753 = vbcast.lane.b32.xlu1 %v751_v8, 256 }
 0x386   :  { %768 = vbcast.lane.b32.xlu0 %v762_v45, 264  ;;  %764 = vbcast.lane.b32.xlu1 %v762_v45, 256 }
 0x3dd   :  { %v388_v46 = vpop.xlane.xlu1 %387 }
 0x3de   :  { %1354 = vrcp.f32 %v388_v46 }
 0x3eb   :  { %v1355_v47 = vpop.eup %1354 }
 0x3ec   :  { %v732_v40 = vpop.permute.xlu1 %731  ;;  %v736_v48 = vpop.permute.xlu0 %735  ;;  %v390_v49 = vmul.f32 %v1355_v47, %v1351_v25 }
 0x3ed   :  { %v770_v50 = vmul.f32 %v732_v40, %v1545_v26  ;;  %v771_v52 = vmul.f32 %v736_v48, %v1547_v27 }
 0x3ee   :  { %v402_v53 = vrot.slane %v390_v49, %v401_v39  ;;  %v394_v54 = vrot.slane %v390_v49, %v1592_v51  ;;  %v418_v26 = vrot.slane %v390_v49, %v417_v44  ;;  %v410_v62 = vrot.slane %v390_v49, %v409_v43 }
 0x3ef   :  { %v778_v42 = vsel %vm171_vm1, %v770_v50, 0.0  ;;  %v779_v55 = vsel %vm171_vm1, %v771_v52, 0.0 }
 0x3f0   :  { %v780_v56 = vadd.f32 %v779_v55, %v778_v42  ;;  %405 = vbcast.lane.b32.xlu0 %v402_v53, 272  ;;  %397 = vbcast.lane.b32.xlu1 %v394_v54, 272  ;;  %v743_v57 = vpop.permute.xlu1 %742  ;;  %v747_v58 = vpop.permute.xlu0 %746 }
 0x3f1   :  { %v772_v59 = vmul.f32 %v743_v57, %v1550_v29  ;;  %v773_v60 = vmul.f32 %v747_v58, %v1559_v31 }
 0x3f2   :  { %v781_v61 = vrot.slane %v780_v56, 4 }
 0x3f3   :  { %v787_v27 = vsel %vm171_vm1, %v772_v59, 0.0  ;;  %v788_v51 = vsel %vm171_vm1, %v773_v60, 0.0 }
 0x3f4   :  { %v789_v63 = vadd.f32 %v788_v51, %v787_v27  ;;  %421 = vbcast.lane.b32.xlu0 %v418_v26, 272  ;;  %413 = vbcast.lane.b32.xlu1 %v410_v62, 272  ;;  %v754_v1 = vpop.permute.xlu1 %753  ;;  %v758_v2 = vpop.permute.xlu0 %757  ;;  %v782_v5 = vadd.f32 %v781_v61, %v780_v56 }
 0x3f5   :  { %v774_v3 = vmul.f32 %v754_v1, %v1562_v33  ;;  %v775_v4 = vmul.f32 %v758_v2, %v1570_v35 }
 0x3f6   :  { %v790_v29 = vrot.slane %v789_v63, 4  ;;  %v783_v19 = vrot.slane %v782_v5, 2 }
 0x3f7   :  { %v796_v31 = vsel %vm171_vm1, %v774_v3, 0.0  ;;  %v797_v6 = vsel %vm171_vm1, %v775_v4, 0.0 }
 0x3f8   :  { %v791_v9 = vadd.f32 %v790_v29, %v789_v63  ;;  %v798_v10 = vadd.f32 %v797_v6, %v796_v31  ;;  %v765_v11 = vpop.permute.xlu1 %764  ;;  %v769_v14 = vpop.permute.xlu0 %768  ;;  %v784_v25 = vadd.f32 %v783_v19, %v782_v5 }
 0x3f9   :  { %v776_v16 = vmul.f32 %v765_v11, %v1572_v36  ;;  %v777_v17 = vmul.f32 %v769_v14, %v1581_v37 }
 0x3fa   :  { %v792_v20 = vrot.slane %v791_v9, 2  ;;  %v799_v21 = vrot.slane %v798_v10, 4  ;;  %v785_v38 = vrot.slane %v784_v25, 1 }
 0x3fb   :  { %v805_v33 = vsel %vm171_vm1, %v776_v16, 0.0  ;;  %v806_v35 = vsel %vm171_vm1, %v777_v17, 0.0  ;;  %v878_v16 = vld [vmem:[#allocation8 + $0x138] sm:$0xff]  ;;  %v877_v17 = vld [vmem:[#allocation8 + $0x130] sm:$0xff] }
 0x3fc   :  { %v793_v22 = vadd.f32 %v792_v20, %v791_v9  ;;  %v800_v23 = vadd.f32 %v799_v21, %v798_v10  ;;  %v807_v24 = vadd.f32 %v806_v35, %v805_v33  ;;  %v786_v8 = vadd.f32 %v785_v38, %v784_v25  ;;  %1241 = vmatpush3.msra.mxu1 %v878_v16  ;;  %v876_v33 = vld [vmem:[#allocation8 + $0x128] sm:$0xff]  ;;  %v1094_v35 = vld [vmem:[#allocation8 + $0x1c3] ss:$0 sm:$0xff]  ;;  %v1095_v25 = vld [vmem:[#allocation8 + $0x1c4] ss:$0 sm:$0xff] }
 0x3fd   :  { %1242 = vmatprep.subr.mxu1 %v1470_v0  ;;  %v872_v38 = vld [vmem:[#allocation8 + $0x108] sm:$0xff] }
 0x3fe   :  { %v801_v28 = vrot.slane %v800_v23, 2  ;;  %v808_v30 = vrot.slane %v807_v24, 4  ;;  %v794_v32 = vrot.slane %v793_v22, 1  ;;  %1243 = vmatpush3.msra.mxu1 %v877_v17 }
 0x3ff   :  { %1244 = vmatprep.subr.mxu1 %v1470_v0 }
 0x400   :  { %v802_v7 = vadd.f32 %v801_v28, %v800_v23  ;;  %v809_v34 = vadd.f32 %v808_v30, %v807_v24  ;;  %v795_v37 = vadd.f32 %v794_v32, %v793_v22  ;;  %v875_v22 = vld [vmem:[#allocation8 + $0x120] sm:$0xff]  ;;  %1245 = vmatpush3.msra.mxu1 %v876_v33  ;;  %v874_v30 = vld [vmem:[#allocation8 + $0x118] sm:$0xff] }
 0x401   :  { %1246 = vmatprep.subr.mxu1 %v1470_v0 }
 0x402   :  { %v803_v36 = vrot.slane %v802_v7, 1  ;;  %v810_v39 = vrot.slane %v809_v34, 2  ;;  %v826_v46 = vsel %vm366_vm3, %v795_v37, %v786_v8  ;;  %1247 = vmatpush3.msra.mxu1 %v875_v22  ;;  %v869_v37 = vld [vmem:[#allocation8 + $0xf0] sm:$0xff]  ;;  %v866_v8 = vld [vmem:[#allocation8 + $0xd8] sm:$0xff] }
 0x403   :  { %1248 = vmatprep.subr.mxu1 %v1470_v0 }
 0x404   :  { %v811_v41 = vadd.f32 %v810_v39, %v809_v34  ;;  %v804_v43 = vadd.f32 %v803_v36, %v802_v7  ;;  %v873_v7 = vld [vmem:[#allocation8 + $0x110] sm:$0xff]  ;;  %1249 = vmatpush3.msra.mxu1 %v874_v30  ;;  %v871_v36 = vld [vmem:[#allocation8 + $0x100] sm:$0xff]  ;;  %v870_v39 = vld [vmem:[#allocation8 + $0xf8] sm:$0xff] }
 0x405   :  { %1250 = vmatprep.subr.mxu1 %v1470_v0 }
 0x406   :  { %v812_v44 = vrot.slane %v811_v41, 1  ;;  %v827_v47 = vsel %vm368_vm4, %v804_v43, %v826_v46  ;;  %1251 = vmatpush3.msra.mxu1 %v873_v7  ;;  %v867_v43 = vld [vmem:[#allocation8 + $0xe0] sm:$0xff] }
 0x407   :  { %1252 = vmatprep.subr.mxu1 %v1470_v0  ;;  %v863_v46 = vld [vmem:[#allocation8 + $0xc0] sm:$0xff] }
 0x408   :  { %v813_v45 = vadd.f32 %v812_v44, %v811_v41  ;;  %1253 = vmatpush3.msra.mxu1 %v872_v38  ;;  %v868_v41 = vld [vmem:[#allocation8 + $0xe8] sm:$0xff]  ;;  %v865_v44 = vld [vmem:[#allocation8 + $0xd0] sm:$0xff] }
 0x409   :  { %1254 = vmatprep.subr.mxu1 %v1470_v0 }
 0x40a   :  { %v828_v40 = vsel %vm370_vm5, %v813_v45, %v827_v47  ;;  %1255 = vmatpush3.msra.mxu1 %v871_v36  ;;  %v864_v45 = vld [vmem:[#allocation8 + $0xc8] sm:$0xff]  ;;  %v977_v47 = vld [vmem:[#allocation8 + $0x1b8] sm:$0xff] }
 0x40b   :  { %829 = vrot.lane.b32.xlu1 %v828_v40, %s1475_s9  ;;  %1256 = vmatprep.subr.mxu1 %v1470_v0  ;;  %v976_v40 = vld [vmem:[#allocation8 + $0x1b0] sm:$0xff] }
 0x40c   :  { %1257 = vmatpush3.msra.mxu1 %v870_v39  ;;  %1276 = vmatpush3.msra.mxu0 %v977_v47 }
 0x40d   :  { %1258 = vmatprep.subr.mxu1 %v1470_v0  ;;  %1277 = vmatprep.subr.mxu0 %v1470_v0 }
 0x40e   :  { %1259 = vmatpush3.msra.mxu1 %v869_v37  ;;  %1278 = vmatpush3.msra.mxu0 %v976_v40 }
 0x40f   :  { %1260 = vmatprep.subr.mxu1 %v1470_v0  ;;  %1279 = vmatprep.subr.mxu0 %v1470_v0 }
 0x410   :  { %1261 = vmatpush3.msra.mxu1 %v868_v41 }
 0x411   :  { %1262 = vmatprep.subr.mxu1 %v1470_v0 }
 0x412   :  { %1263 = vmatpush3.msra.mxu1 %v867_v43 }
 0x413   :  { %1264 = vmatprep.subr.mxu1 %v1470_v0 }
 0x414   :  { %1265 = vmatpush3.msra.mxu1 %v866_v8 }
 0x415   :  { %1266 = vmatprep.subr.mxu1 %v1470_v0 }
 0x416   :  { %1267 = vmatpush3.msra.mxu1 %v865_v44 }
 0x417   :  { %1268 = vmatprep.subr.mxu1 %v1470_v0 }
 0x418   :  { %1269 = vmatpush3.msra.mxu1 %v864_v45 }
 0x419   :  { %1270 = vmatprep.subr.mxu1 %v1470_v0 }
 0x41a   :  { %1271 = vmatpush3.msra.mxu1 %v863_v46 }
 0x462   :  { %v398_v48 = vpop.permute.xlu1 %397  ;;  %v406_v49 = vpop.permute.xlu0 %405 }
 0x463   :  { %v423_v50 = vmul.f32 %v398_v48, %v1523_v12  ;;  %v424_v52 = vmul.f32 %v406_v49, %v1525_v13  ;;  %v975_v48 = vld [vmem:[#allocation8 + $0x1a8] sm:$0xff]  ;;  %v974_v49 = vld [vmem:[#allocation8 + $0x1a0] sm:$0xff] }
 0x464   :  { %1280 = vmatpush3.msra.mxu0 %v975_v48 }
 0x465   :  { %v427_v53 = vsel %vm171_vm1, %v423_v50, 0.0  ;;  %v434_v54 = vsel %vm171_vm1, %v424_v52, 0.0  ;;  %1281 = vmatprep.subr.mxu0 %v1470_v0  ;;  %v973_v50 = vld [vmem:[#allocation8 + $0x198] sm:$0xff] }
 0x466   :  { %v428_v42 = vrot.slane %v427_v53, 4  ;;  %v435_v55 = vrot.slane %v434_v54, 4  ;;  %v414_v56 = vpop.permute.xlu1 %413  ;;  %v422_v57 = vpop.permute.xlu0 %421  ;;  %1282 = vmatpush3.msra.mxu0 %v974_v49 }
 0x467   :  { %v425_v58 = vmul.f32 %v414_v56, %v1528_v15  ;;  %v426_v59 = vmul.f32 %v422_v57, %v1537_v18  ;;  %1283 = vmatprep.subr.mxu0 %v1470_v0  ;;  %v970_v56 = vld [vmem:[#allocation8 + $0x180] sm:$0xff]  ;;  %v969_v57 = vld [vmem:[#allocation8 + $0x178] sm:$0xff] }
 0x468   :  { %v429_v60 = vadd.f32 %v428_v42, %v427_v53  ;;  %v436_v61 = vadd.f32 %v435_v55, %v434_v54  ;;  %1284 = vmatpush3.msra.mxu0 %v973_v50  ;;  %v972_v42 = vld [vmem:[#allocation8 + $0x190] sm:$0xff]  ;;  %v971_v55 = vld [vmem:[#allocation8 + $0x188] sm:$0xff] }
 0x469   :  { %v441_v26 = vsel %vm171_vm1, %v425_v58, 0.0  ;;  %v448_v12 = vsel %vm171_vm1, %v426_v59, 0.0  ;;  %1285 = vmatprep.subr.mxu0 %v1470_v0  ;;  %v968_v58 = vld [vmem:[#allocation8 + $0x170] sm:$0xff]  ;;  %v967_v59 = vld [vmem:[#allocation8 + $0x168] sm:$0xff] }
 0x46a   :  { %v430_v62 = vrot.slane %v429_v60, 2  ;;  %v437_v13 = vrot.slane %v436_v61, 2  ;;  %v442_v27 = vrot.slane %v441_v26, 4  ;;  %v449_v51 = vrot.slane %v448_v12, 4  ;;  %1286 = vmatpush3.msra.mxu0 %v972_v42 }
 0x46b   :  { %1287 = vmatprep.subr.mxu0 %v1470_v0 }
 0x46c   :  { %v443_v63 = vadd.f32 %v442_v27, %v441_v26  ;;  %v450_v1 = vadd.f32 %v449_v51, %v448_v12  ;;  %v431_v2 = vadd.f32 %v430_v62, %v429_v60  ;;  %v438_v3 = vadd.f32 %v437_v13, %v436_v61  ;;  %1288 = vmatpush3.msra.mxu0 %v971_v55  ;;  %v966_v60 = vld [vmem:[#allocation8 + $0x160] sm:$0xff]  ;;  %v965_v13 = vld [vmem:[#allocation8 + $0x158] sm:$0xff]  ;;  %v964_v27 = vld [vmem:[#allocation8 + $0x150] sm:$0xff] }
 0x46d   :  { %1289 = vmatprep.subr.mxu0 %v1470_v0  ;;  %v963_v51 = vld [vmem:[#allocation8 + $0x148] sm:$0xff] }
 0x46e   :  { %v444_v4 = vrot.slane %v443_v63, 2  ;;  %v451_v5 = vrot.slane %v450_v1, 2  ;;  %v432_v15 = vrot.slane %v431_v2, 1  ;;  %v439_v31 = vrot.slane %v438_v3, 1  ;;  %1290 = vmatpush3.msra.mxu0 %v970_v56 }
 0x46f   :  { %1291 = vmatprep.subr.mxu0 %v1470_v0 }
 0x470   :  { %v445_v29 = vadd.f32 %v444_v4, %v443_v63  ;;  %v452_v18 = vadd.f32 %v451_v5, %v450_v1  ;;  %v433_v9 = vadd.f32 %v432_v15, %v431_v2  ;;  %v440_v10 = vadd.f32 %v439_v31, %v438_v3  ;;  %1292 = vmatpush3.msra.mxu0 %v969_v57  ;;  %v962_v63 = vld [vmem:[#allocation8 + $0x140] sm:$0xff] }
 0x471   :  { %1293 = vmatprep.subr.mxu0 %v1470_v0  ;;  %v1096_v1 = vld [vmem:[#allocation8 + $0x1c5] ss:$0 sm:$0xff]  ;;  %v1097_v3 = vld [vmem:[#allocation8 + $0x1c6] ss:$0 sm:$0xff]  ;;  %v1098_v31 = vld [vmem:[#allocation8 + $0x1c7] ss:$0 sm:$0xff] }
 0x472   :  { %v446_v6 = vrot.slane %v445_v29, 1  ;;  %v453_v11 = vrot.slane %v452_v18, 1  ;;  %v818_v20 = vsel %vm366_vm3, %v440_v10, %v433_v9  ;;  %1294 = vmatpush3.msra.mxu0 %v968_v58 }
 0x473   :  { %1295 = vmatprep.subr.mxu0 %v1470_v0 }
 0x474   :  { %v447_v14 = vadd.f32 %v446_v6, %v445_v29  ;;  %v454_v19 = vadd.f32 %v453_v11, %v452_v18  ;;  %1296 = vmatpush3.msra.mxu0 %v967_v59  ;;  %v1099_v6 = vld [vmem:[#allocation8 + $0x1c8] ss:$0 sm:$0xff] }
 0x475   :  { %1297 = vmatprep.subr.mxu0 %v1470_v0 }
 0x476   :  { %v819_v21 = vsel %vm368_vm4, %v447_v14, %v818_v20  ;;  %1298 = vmatpush3.msra.mxu0 %v966_v60 }
 0x477   :  { %v820_v24 = vsel %vm370_vm5, %v454_v19, %v819_v21  ;;  %1299 = vmatprep.subr.mxu0 %v1470_v0 }
 0x478   :  { %1300 = vmatpush3.msra.mxu0 %v965_v13 }
 0x479   :  { %1301 = vmatprep.subr.mxu0 %v1470_v0 }
 0x47a   :  { %1302 = vmatpush3.msra.mxu0 %v964_v27 }
 0x47b   :  { %1303 = vmatprep.subr.mxu0 %v1470_v0 }
 0x47c   :  { %1304 = vmatpush3.msra.mxu0 %v963_v51 }
 0x47d   :  { %v830_v23 = vpop.permute.xlu1 %829  ;;  %1305 = vmatprep.subr.mxu0 %v1470_v0 }
 0x47e   :  { %v832_v28 = vsel %vm171_vm1, %v820_v24, %v830_v23  ;;  %1306 = vmatpush3.msra.mxu0 %v962_v63 }
 0x47f   :  { %v838_v32 = vmul.f32 %v1094_v35, %v832_v28 }
 0x481   :  { %v1676_v34 = vadd.f32 %v1095_v25, %v838_v32 }
 0x483   :  { %846 = vrot.lane.b32.xlu0 %v1676_v34, %s1473_s2 }
 0x4f5   :  { %v847_v52 = vpop.permute.xlu0 %846 }
 0x4f6   :  { %v849_v53 = vmul.f32 %v847_v52, %v1676_v34  ;;  %v850_v54 = vadd.f32 %v847_v52, %v1676_v34 }
 0x4f8   :  { %856 = vrot.lane.b32.xlu0 %v850_v54, %s1473_s2  ;;  %852 = vrot.lane.b32.xlu1 %v849_v53, %s1476_s10 }
 0x56a   :  { %v857_v61 = vpop.permute.xlu0 %856  ;;  %v853_v26 = vpop.permute.xlu1 %852 }
 0x56b   :  { %v860_v12 = vsel %vm859_vm11, %v1676_v34, %v853_v26 }
 0x56c   :  { %v862_v62 = vsel %vm861_vm12, %v860_v12, %v857_v61 }
 0x56d   :  { %1273 = vmatmul.mubr.f32.vlgmr.msra.gmra.mxu1 %v862_v62 }
 0x62d   :  { %v945_v2 = vpop.f32.mrf.mxu1 }
 0x62e   :  { %v954_v4 = vmul.f32 %v1096_v1, %v945_v2 }
 0x62f   :  { %v1274_v5 = vpop.f32.mrf.mxu1 }
 0x630   :  { %v960_v29 = vadd.f32 %v1097_v3, %v954_v4 }
 0x632   :  { %v961_v15 = vmax.f32 %v960_v29, 0.0 }
 0x634   :  { %1308 = vmatmul.mubr.f32.vlgmr.msra.gmra.mxu0 %v961_v15 }
 0x6f4   :  { %v1044_v18 = vpop.f32.mrf.mxu0 }
 0x6f5   :  { %v1053_v9 = vmul.f32 %v1098_v31, %v1044_v18 }
 0x6f6   :  { %v1309_v10 = vpop.f32.mrf.mxu0 }
 0x6f7   :  { %v1059_v11 = vadd.f32 %v1099_v6, %v1053_v9 }
 0x6f9   :  { %v1060_v14 = vmax.f32 %v1059_v11, 0.0 }
 0x6fb   :  { %1061 = vst [vmem:[#allocation10] sm:$0xf] %v1060_v14 }
 0x6fc   :  { %1447 = shalt.err (!%p1444_p10)
}
 0x6fd   :  { %1071 = dma.vmem_to_hbm [thread:$0]  %s1069_s12, 64, %s1717_s4, [#allocation4]  }
 0x6fe   :  { %1462 = dma.done.wait [#allocation4], 64  }
 0x6ff   :  { %1463 = vsyncadd [#allocation4], 4294967232 }
 0x700   :  { %1075 = vsyncpa [#allocation3], 1 }
 0x701   :  { %1076 = vsyncpa [#allocation6], 1 }
 0x702   :  { %1077 = vsyncpa [#allocation9], 1 }
 0x703   :  { %1078 = vsyncpa [#allocation4], 1 }

</bundles_post_ra>
